<compile_context>
chip_gen: v6e
topology: v6e:2x2x1
jax: 0.10.0
libtpu: 0.0.40
codegen_flags: <defaults>
</compile_context>

<pallas_src>
import functools

import jax
import jax.numpy as jnp
from jax import lax
from jax.experimental import pallas as pl
from jax.experimental.pallas import tpu as pltpu

MIN_VAL = 0.001
PENALTY_NEGATIVE = 100000.0

LANES = 128
SUBLANES = 8
TILE_ROWS = 4096     # (4096, 128) f32 = 2 MiB per input per pipeline buffer.


def _round_up(x, m):
    return ((x + m - 1) // m) * m


def _num_tensorcores():
    """2 on v7x-class chips (2 TensorCores), else 1.  Conservative fallback = 1."""
    try:
        kind = jax.devices()[0].device_kind.lower()
        if "v7" in kind or "7x" in kind:
            return 2
    except Exception:
        pass
    return 1


def _qloss_kernel(inp_ref, tgt_ref, out_ref, *, rows, tile_m, steps_per_core,
                  min_val, penalty_negative, exact_ratio):
    c = pl.program_id(0)          # partial-sum / core axis
    s = pl.program_id(1)          # reduction axis over row tiles

    # Zero the resident (8, 128) accumulator block at the start of each c-range.
    @pl.when(s == 0)
    def _init():
        out_ref[...] = jnp.zeros_like(out_ref)

    inp = inp_ref[...]
    tgt = tgt_ref[...]

    # ==0 -> 1e-7 fixups (identical to the conditional adds in the PyTorch code).
    inp = jnp.where(inp == 0.0, 1e-7, inp)
    tgt = jnp.where(tgt == 0.0, 1e-7, tgt)

    if exact_ratio:
        # Literal PyTorch form (two divides) — only needed if targets may be <= 0.
        ratio = jnp.maximum(inp / tgt, tgt / inp)
    else:
        # Single divide; bit-exact to max(inp/tgt, tgt/inp) when inp and tgt are both
        # positive (inp >= min_val in the branch where this value is selected).
        ratio = jnp.maximum(inp, tgt) / jnp.minimum(inp, tgt)

    q = jnp.where(inp < min_val, (1.0 - inp) * penalty_negative, ratio)

    def _accumulate(vals):
        # VPU-only fold (tile_m, 128) -> (8, 128); cross-lane reduce deferred to XLA.
        out_ref[...] += jnp.sum(
            vals.reshape(tile_m // SUBLANES, SUBLANES, LANES), axis=0)

    # Logical (unclamped) first row covered by this grid step.  Only tiles that touch
    # or overhang the end of the valid data pay for the row mask.
    row0 = (c * steps_per_core + s) * tile_m
    end_row = row0 + tile_m

    @pl.when(end_row <= rows)
    def _fast():
        _accumulate(q)

    @pl.when(end_row > rows)
    def _masked():
        row_ids = lax.broadcasted_iota(jnp.int32, (tile_m, LANES), 0) + row0
        _accumulate(jnp.where(row_ids < rows, q, 0.0))


def qloss(pred, target, *, min_val=MIN_VAL, penalty_negative=PENALTY_NEGATIVE,
          tile_rows=TILE_ROWS, num_partials=None, exact_ratio=False):
    """pred: (N, 1) float ; target: (N,) float -> scalar float32 q-error mean.

    exact_ratio=False uses a single divide (bit-exact for positive targets, which is
    the q-error domain); pass exact_ratio=True to reproduce the PyTorch arithmetic
    for arbitrary-sign targets.
    """
    n = int(target.shape[0])

    pred_flat = pred.reshape(-1).astype(jnp.float32)   # free when already f32
    tgt_flat = target.reshape(-1).astype(jnp.float32)

    n_tc = _num_tensorcores()
    if num_partials is None:
        num_partials = n_tc
    num_partials = max(1, int(num_partials))

    rows_needed = pl.cdiv(n, LANES)
    if rows_needed < SUBLANES:
        rows = SUBLANES                                # tiny input: one (8, 128) block
        tile_m = SUBLANES
    else:
        rows = rows_needed                             # keep ragged rows; mask in-kernel
        tile_m = min(_round_up(int(tile_rows), SUBLANES),
                     (rows // SUBLANES) * SUBLANES)    # multiple of 8, <= rows

    padded_len = rows * LANES
    pad = padded_len - n
    if pad:
        # Pad only up to the next 128-lane boundary (or one (8,128) block for tiny
        # inputs) with 1.0: each pad element contributes exactly q = 1 and is
        # subtracted below.  When N % 128 == 0 this branch (and its copy) is skipped
        # entirely and the reshape is a free bitcast.
        pred_flat = jnp.pad(pred_flat, (0, pad), constant_values=1.0)
        tgt_flat = jnp.pad(tgt_flat, (0, pad), constant_values=1.0)
    pred2d = pred_flat.reshape(rows, LANES)
    tgt2d = tgt_flat.reshape(rows, LANES)

    steps_total = pl.cdiv(rows, tile_m)
    steps_per_core = pl.cdiv(steps_total, num_partials)
    last_block = steps_total - 1

    kernel = functools.partial(
        _qloss_kernel,
        rows=rows, tile_m=tile_m, steps_per_core=steps_per_core,
        min_val=float(min_val), penalty_negative=float(penalty_negative),
        exact_ratio=bool(exact_ratio))

    def row_map(c, s):
        # Clamp overhanging block indices (can occur when steps_total does not divide
        # evenly across partials); the kernel masks their contribution to zero.
        return (jnp.minimum(c * steps_per_core + s, last_block), 0)

    # Real 2-TensorCore split only on multi-core chips; otherwise plain "parallel".
    first_axis = pltpu.CORE_PARALLEL if (num_partials > 1 and n_tc > 1) else pltpu.PARALLEL

    partials = pl.pallas_call(
        kernel,
        out_shape=jax.ShapeDtypeStruct((num_partials * SUBLANES, LANES), jnp.float32),
        grid_spec=pltpu.PrefetchScalarGridSpec(
            num_scalar_prefetch=0,
            grid=(num_partials, steps_per_core),
            in_specs=[
                pl.BlockSpec((tile_m, LANES), row_map),
                pl.BlockSpec((tile_m, LANES), row_map),
            ],
            out_specs=pl.BlockSpec((SUBLANES, LANES), lambda c, s: (c, 0)),
        ),
        compiler_params=pltpu.CompilerParams(
            dimension_semantics=(first_axis, pltpu.ARBITRARY)),
    )(pred2d, tgt2d)

    # Tiny final reduce (num_partials*8*128 elements), pad correction and 1/n in XLA.
    total = jnp.sum(partials)
    return (total - jnp.float32(pad)) / jnp.float32(n)


def qloss_ref(pred, target, *, min_val=MIN_VAL, penalty_negative=PENALTY_NEGATIVE):
    """Pure-JAX reference mirroring the PyTorch forward (input (N,1), target (N,))."""
    inp = pred.astype(jnp.float32)                 # (N, 1)
    tgt = target.astype(jnp.float32)               # (N,)
    inp = inp + (inp == 0.0).astype(jnp.float32) * 1e-7
    tgt = tgt + (tgt == 0.0).astype(jnp.float32) * 1e-7
    tgt_col = tgt.reshape(-1, 1)
    pen = (inp < min_val).astype(jnp.float32)
    inv = (inp >= min_val).astype(jnp.float32)
    q = (1.0 - inp) * pen * penalty_negative
    q = q + jnp.maximum((inp * inv) / tgt_col, (tgt_col * inv) / inp)
    return jnp.mean(q)


if __name__ == "__main__":
    key = jax.random.PRNGKey(0)
    k1, k2, k3, k4, k5, k6, k7, k8 = jax.random.split(key, 8)
    rtol = atol = 5e-5

    # Case 1: small ragged N — exercises the ==0 -> 1e-7 fixup, the < min_val penalty
    # branch, the tiny-input (single (8,128) block) path and the pad-with-1.0 fixup.
    N1 = 300
    pred1 = jax.random.uniform(k1, (N1, 1), jnp.float32, 0.0, 5.0)
    pred1 = pred1.at[0, 0].set(0.0)        # ==0 fixup path (then penalty branch)
    pred1 = pred1.at[1, 0].set(0.0005)     # < min_val penalty path
    tgt1 = jax.random.uniform(k2, (N1,), jnp.float32, 0.1, 10.0)
    out1 = jax.block_until_ready(qloss(pred1, tgt1))
    out1b = jax.block_until_ready(qloss(pred1, tgt1, exact_ratio=True))
    ref1 = jax.block_until_ready(qloss_ref(pred1, tgt1))
    assert jnp.allclose(out1, ref1, rtol=rtol, atol=atol), (out1, ref1)
    assert jnp.allclose(out1b, ref1, rtol=rtol, atol=atol), (out1b, ref1)

    # Case 2: small tiles + forced 2 partial ranges — exercises multi-step accumulation,
    # the gated partial-last-block row mask, the clamped overhang block and lane padding.
    N2 = 4500
    pred2 = jax.random.uniform(k3, (N2, 1), jnp.float32, 0.001, 20.0)
    tgt2 = jax.random.uniform(k4, (N2,), jnp.float32, 0.1, 50.0)
    out2 = jax.block_until_ready(qloss(pred2, tgt2, tile_rows=8, num_partials=2))
    ref2 = jax.block_until_ready(qloss_ref(pred2, tgt2))
    assert jnp.allclose(out2, ref2, rtol=rtol, atol=atol), (out2, ref2)

    # Case 3: N a multiple of 128 — zero-copy (free reshape, no pad) fast path.
    N3 = 4096
    pred3 = jax.random.uniform(k5, (N3, 1), jnp.float32, 0.01, 10.0)
    tgt3 = jax.random.uniform(k6, (N3,), jnp.float32, 0.1, 10.0)
    out3 = jax.block_until_ready(qloss(pred3, tgt3))
    ref3 = jax.block_until_ready(qloss_ref(pred3, tgt3))
    assert jnp.allclose(out3, ref3, rtol=rtol, atol=atol), (out3, ref3)

    # Case 4: a negative target with exact_ratio=True reproduces the literal PyTorch
    # arithmetic (the default single-divide form assumes positive targets).
    N4 = 200
    pred4 = jax.random.uniform(k7, (N4, 1), jnp.float32, 0.5, 2.0)
    tgt4 = jax.random.uniform(k8, (N4,), jnp.float32, 0.5, 2.0)
    tgt4 = tgt4.at[3].set(-1.7)
    out4 = jax.block_until_ready(qloss(pred4, tgt4, exact_ratio=True))
    ref4 = jax.block_until_ready(qloss_ref(pred4, tgt4))
    assert jnp.allclose(out4, ref4, rtol=rtol, atol=atol), (out4, ref4)

    print("KERNEL_OK")
</pallas_src>

<mosaic_0001>
module attributes {stable_mosaic.version = 11 : i64} {
  func.func @_qloss_kernel(%arg0: i32, %arg1: i32, %arg2: memref<8x128xf32, #tpu.memory_space<vmem>>, %arg3: memref<8x128xf32, #tpu.memory_space<vmem>>, %arg4: memref<8x128xf32, #tpu.memory_space<vmem>>) attributes {dimension_semantics = [#tpu.dimension_semantics<parallel>, #tpu.dimension_semantics<arbitrary>], iteration_bounds = array<i64: 1, 1>, scalar_prefetch = 0 : i64, scratch_operands = 0 : i64, tpu.core_type = #tpu.core_type<tc>, window_params = [{transform_indices = @transform_0, window_bounds = array<i64: 8, 128>}, {transform_indices = @transform_1, window_bounds = array<i64: 8, 128>}, {transform_indices = @transform_2, window_bounds = array<i64: 8, 128>}]} {
    %c0_i32 = arith.constant 0 : i32
    %0 = arith.cmpi eq, %arg1, %c0_i32 : i32
    %1 = arith.extui %0 : i1 to i32
    %c0_i32_0 = arith.constant 0 : i32
    %2 = arith.cmpi ne, %1, %c0_i32_0 : i32
    scf.if %2 {
      %cst_15 = arith.constant 0.000000e+00 : f32
      %33 = vector.broadcast %cst_15 : f32 to vector<8x128xf32>
      %c0_16 = arith.constant 0 : index
      %c0_17 = arith.constant 0 : index
      %34 = vector.load %arg4[%c0_16, %c0_17] : memref<8x128xf32, #tpu.memory_space<vmem>>, vector<8x128xf32>
      tpu.vector_store %arg4[%c0_16, %c0_17], %33 {strides = array<i32>} : memref<8x128xf32, #tpu.memory_space<vmem>>, vector<8x128xf32>,
    } else {
    }
    %c0 = arith.constant 0 : index
    %c0_1 = arith.constant 0 : index
    %3 = vector.load %arg2[%c0, %c0_1] : memref<8x128xf32, #tpu.memory_space<vmem>>, vector<8x128xf32>
    %c0_2 = arith.constant 0 : index
    %c0_3 = arith.constant 0 : index
    %4 = vector.load %arg3[%c0_2, %c0_3] : memref<8x128xf32, #tpu.memory_space<vmem>>, vector<8x128xf32>
    %cst = arith.constant 0.000000e+00 : f32
    %5 = vector.broadcast %cst : f32 to vector<8x128xf32>
    %6 = arith.cmpf oeq, %3, %5 : vector<8x128xf32>
    %cst_4 = arith.constant 1.000000e-07 : f32
    %7 = vector.broadcast %cst_4 : f32 to vector<8x128xf32>
    %8 = arith.select %6, %7, %3 : vector<8x128xi1>, vector<8x128xf32>
    %cst_5 = arith.constant 0.000000e+00 : f32
    %9 = vector.broadcast %cst_5 : f32 to vector<8x128xf32>
    %10 = arith.cmpf oeq, %4, %9 : vector<8x128xf32>
    %cst_6 = arith.constant 1.000000e-07 : f32
    %11 = vector.broadcast %cst_6 : f32 to vector<8x128xf32>
    %12 = arith.select %10, %11, %4 : vector<8x128xi1>, vector<8x128xf32>
    %13 = arith.maximumf %8, %12 : vector<8x128xf32>
    %14 = arith.minimumf %8, %12 : vector<8x128xf32>
    %15 = arith.divf %13, %14 : vector<8x128xf32>
    %cst_7 = arith.constant 1.000000e-03 : f32
    %16 = vector.broadcast %cst_7 : f32 to vector<8x128xf32>
    %17 = arith.cmpf olt, %8, %16 : vector<8x128xf32>
    %cst_8 = arith.constant 1.000000e+00 : f32
    %18 = vector.broadcast %cst_8 : f32 to vector<8x128xf32>
    %19 = arith.subf %18, %8 : vector<8x128xf32>
    %cst_9 = arith.constant 1.000000e+05 : f32
    %20 = vector.broadcast %cst_9 : f32 to vector<8x128xf32>
    %21 = arith.mulf %19, %20 : vector<8x128xf32>
    %22 = arith.select %17, %21, %15 : vector<8x128xi1>, vector<8x128xf32>
    %c1_i32 = arith.constant 1 : i32
    %23 = arith.muli %arg0, %c1_i32 : i32
    %24 = arith.addi %23, %arg1 : i32
    %c8_i32 = arith.constant 8 : i32
    %25 = arith.muli %24, %c8_i32 : i32
    %c8_i32_10 = arith.constant 8 : i32
    %26 = arith.addi %25, %c8_i32_10 : i32
    %c8_i32_11 = arith.constant 8 : i32
    %27 = arith.cmpi sle, %26, %c8_i32_11 : i32
    %28 = arith.extui %27 : i1 to i32
    %c0_i32_12 = arith.constant 0 : i32
    %29 = arith.cmpi ne, %28, %c0_i32_12 : i32
    scf.if %29 {
      %c0_15 = arith.constant 0 : index
      %c0_16 = arith.constant 0 : index
      %33 = vector.load %arg4[%c0_15, %c0_16] : memref<8x128xf32, #tpu.memory_space<vmem>>, vector<8x128xf32>
      %34 = vector.shape_cast %22 : vector<8x128xf32> to vector<1x8x128xf32>
      %cst_17 = arith.constant dense<0.000000e+00> : vector<8x128xf32>
      %35 = vector.multi_reduction <add>, %34, %cst_17 [0] : vector<1x8x128xf32> to vector<8x128xf32>
      %36 = arith.addf %33, %35 : vector<8x128xf32>
      %c0_18 = arith.constant 0 : index
      %c0_19 = arith.constant 0 : index
      %37 = vector.load %arg4[%c0_18, %c0_19] : memref<8x128xf32, #tpu.memory_space<vmem>>, vector<8x128xf32>
      tpu.vector_store %arg4[%c0_18, %c0_19], %36 {strides = array<i32>} : memref<8x128xf32, #tpu.memory_space<vmem>>, vector<8x128xf32>,
    } else {
    }
    %c8_i32_13 = arith.constant 8 : i32
    %30 = arith.cmpi sgt, %26, %c8_i32_13 : i32
    %31 = arith.extui %30 : i1 to i32
    %c0_i32_14 = arith.constant 0 : i32
    %32 = arith.cmpi ne, %31, %c0_i32_14 : i32
    scf.if %32 {
      %33 = tpu.iota {dimensions = array<i32: 0>} : vector<8x128xi32>
      %34 = vector.broadcast %25 : i32 to vector<8x128xi32>
      %35 = arith.addi %33, %34 : vector<8x128xi32>
      %c8_i32_15 = arith.constant 8 : i32
      %36 = vector.broadcast %c8_i32_15 : i32 to vector<8x128xi32>
      %37 = arith.cmpi slt, %35, %36 : vector<8x128xi32>
      %cst_16 = arith.constant 0.000000e+00 : f32
      %38 = vector.broadcast %cst_16 : f32 to vector<8x128xf32>
      %39 = arith.select %37, %22, %38 : vector<8x128xi1>, vector<8x128xf32>
      %c0_17 = arith.constant 0 : index
      %c0_18 = arith.constant 0 : index
      %40 = vector.load %arg4[%c0_17, %c0_18] : memref<8x128xf32, #tpu.memory_space<vmem>>, vector<8x128xf32>
      %41 = vector.shape_cast %39 : vector<8x128xf32> to vector<1x8x128xf32>
      %cst_19 = arith.constant dense<0.000000e+00> : vector<8x128xf32>
      %42 = vector.multi_reduction <add>, %41, %cst_19 [0] : vector<1x8x128xf32> to vector<8x128xf32>
      %43 = arith.addf %40, %42 : vector<8x128xf32>
      %c0_20 = arith.constant 0 : index
      %c0_21 = arith.constant 0 : index
      %44 = vector.load %arg4[%c0_20, %c0_21] : memref<8x128xf32, #tpu.memory_space<vmem>>, vector<8x128xf32>
      tpu.vector_store %arg4[%c0_20, %c0_21], %43 {strides = array<i32>} : memref<8x128xf32, #tpu.memory_space<vmem>>, vector<8x128xf32>,
    } else {
    }
    return
  }
  func.func @transform_0(%arg0: i32, %arg1: i32) -> (i32, i32) {
    %c1_i32 = arith.constant 1 : i32
    %0 = arith.muli %arg0, %c1_i32 : i32
    %1 = arith.addi %0, %arg1 : i32
    %c0_i32 = arith.constant 0 : i32
    %2 = arith.minsi %1, %c0_i32 : i32
    %c0_i32_0 = arith.constant 0 : i32
    %c0_i32_1 = arith.constant 0 : i32
    return %2, %c0_i32_0 : i32, i32
  }
  func.func @transform_1(%arg0: i32, %arg1: i32) -> (i32, i32) {
    %c1_i32 = arith.constant 1 : i32
    %0 = arith.muli %arg0, %c1_i32 : i32
    %1 = arith.addi %0, %arg1 : i32
    %c0_i32 = arith.constant 0 : i32
    %2 = arith.minsi %1, %c0_i32 : i32
    %c0_i32_0 = arith.constant 0 : i32
    %c0_i32_1 = arith.constant 0 : i32
    return %2, %c0_i32_0 : i32, i32
  }
  func.func @transform_2(%arg0: i32, %arg1: i32) -> (i32, i32) {
    %c0_i32 = arith.constant 0 : i32
    %c0_i32_0 = arith.constant 0 : i32
    return %arg0, %c0_i32 : i32, i32
  }
}

</mosaic_0001>

<bundles_post_ra>
// kernel: tpu_custom_call.1
= control target key start
LH: loop header
LB: loop body
LE: loop exit
PB: predicated region body
PF: predicated region fallthrough
CT: control target
= control target key end

     0   :  { %7 = vsyncpa [#allocation3], 0  ;;  %s215_s0 = inlined_call_operand.hbm [shape: f32[8,128], index: 0, kind: input, shape index: {}]   ;;  %s216_s1 = inlined_call_operand.hbm [shape: f32[8,128], index: 1, kind: input, shape index: {}]   ;;  %s217_s2 = inlined_call_operand.hbm [shape: f32[8,128], index: 2, kind: output, shape index: {}]  }
   0x1   :  { %8 = vsyncpa [#allocation6], 0 }
   0x2   :  { %9 = vsyncpa [#allocation4], 0  ;;  %s188_s9 = smov [#allocation2]   ;;  %s189_s11 = smov [#allocation5]  }
   0x3   :  { %s21_s10 = sshll.u32 %s188_s9, 4  ;;  %s36_s12 = sshll.u32 %s189_s11, 4  ;;  %s22_s10 = int_to_ptr.vmem [resolvable:$true] %s21_s10  ;;  %s37_s12 = int_to_ptr.vmem [resolvable:$true] %s36_s12 }
   0x4   :  { %s130_s13 = scalar_lea.vmem %s22_s10, 128  ;;  %p135_p1 = scmp.lt.s32.totalorder %s22_s10, %s22_s10 }
   0x5   :  { %p131_p0 = scmp.ne.s32.totalorder %s22_s10, %s130_s13  ;;  %p136_p2 = scmp.lt.s32.totalorder %s130_s13, %s130_s13 }
   0x7   :  { %p137_p3 = por %p136_p2, %p135_p1 }
   0x9   :  { %p138_p4 = pnand %p137_p3, %p131_p0 }
   0xb   :  { %141 = shalt.err (!%p138_p4)
}
   0xc   :  { %24 = dma.hbm_to_vmem [thread:$0]  %s215_s0, 128, %s22_s10, [#allocation3]  }
   0xd   :  { %s150_s16 = scalar_lea.vmem %s37_s12, 128  ;;  %p155_p6 = scmp.lt.s32.totalorder %s37_s12, %s37_s12 }
   0xe   :  { %p151_p5 = scmp.ne.s32.totalorder %s37_s12, %s150_s16  ;;  %p156_p7 = scmp.lt.s32.totalorder %s150_s16, %s150_s16 }
  0x10   :  { %p157_p8 = por %p156_p7, %p155_p6 }
  0x12   :  { %p158_p9 = pnand %p157_p8, %p151_p5 }
  0x14   :  { %161 = shalt.err (!%p158_p9)
}
  0x15   :  { %39 = dma.hbm_to_vmem [thread:$0]  %s216_s1, 128, %s37_s12, [#allocation6]  }
  0x16   :  { %182 = dma.done.wait [#allocation3], 128  }
  0x17   :  { %183 = vsyncadd [#allocation3], 4294967168 }
  0x18   :  { %184 = dma.done.wait [#allocation6], 128  }
  0x19   :  { %185 = vsyncadd [#allocation6], 4294967168  ;;  %v57_v0 = vld [vmem:[#allocation2] sm:$0xff]  ;;  %v58_v1 = vld [vmem:[#allocation5] sm:$0xff]  ;;  %s190_s0 = smov [#allocation7]  }
  0x1a   :  { %vm59_vm0 = vcmp.eq.f32.partialorder %v57_v0, 0.0  ;;  %vm61_vm1 = vcmp.eq.f32.partialorder %v58_v1, 0.0  ;;  %s102_s1 = sshll.u32 %s190_s0, 4  ;;  %s103_s1 = int_to_ptr.vmem [resolvable:$true] %s102_s1 }
  0x1b   :  { %v60_v2 = vsel %vm59_vm0, 1e-07, %v57_v0  ;;  %v62_v3 = vsel %vm61_vm1, 1e-07, %v58_v1  ;;  %s162_s19 = scalar_lea.vmem %s103_s1, 128  ;;  %p167_p11 = scmp.lt.s32.totalorder %s103_s1, %s103_s1 }
  0x1c   :  { %v64_v4 = vmin.f32 %v60_v2, %v62_v3  ;;  %v68_v5 = vsub.f32 1.0, %v60_v2  ;;  %v63_v6 = vmax.f32 %v60_v2, %v62_v3  ;;  %vm67_vm2 = vcmp.lt.f32.partialorder %v60_v2, 0.001  ;;  %p163_p10 = scmp.ne.s32.totalorder %s103_s1, %s162_s19  ;;  %p168_p12 = scmp.lt.s32.totalorder %s162_s19, %s162_s19 }
  0x1e   :  { %120 = vrcp.f32 %v64_v4  ;;  %v69_v7 = vmul.f32 100000.0, %v68_v5  ;;  %p169_p13 = por %p168_p12, %p167_p11 }
  0x20   :  { %p170_p0 = pnand %p169_p13, %p163_p10 }
  0x2b   :  { %v121_v8 = vpop.eup %120 }
  0x2c   :  { %v66_v9 = vmul.f32 %v121_v8, %v63_v6 }
  0x2e   :  { %v70_v10 = vsel %vm67_vm2, %v69_v7, %v66_v9 }
  0x2f   :  { %81 = vst [vmem:[#allocation7] sm:$0xff] %v70_v10 }
  0x30   :  { %173 = shalt.err (!%p170_p0)
}
  0x31   :  { %105 = dma.vmem_to_hbm [thread:$0]  %s103_s1, 128, %s217_s2, [#allocation4]  }
  0x32   :  { %186 = dma.done.wait [#allocation4], 128  }
  0x33   :  { %187 = vsyncadd [#allocation4], 4294967168 }
  0x34   :  { %109 = vsyncpa [#allocation3], 1 }
  0x35   :  { %110 = vsyncpa [#allocation6], 1 }
  0x36   :  { %111 = vsyncpa [#allocation4], 1 }

</bundles_post_ra>
